<compile_context>
chip_gen: v7x
topology: tpu7x:2x2x1
jax: 0.10.0
libtpu: 0.0.40
codegen_flags: <defaults>
</compile_context>

<pallas_src>
import math

import jax
import jax.numpy as jnp
from jax import lax
from jax.experimental import pallas as pl
from jax.experimental.pallas import tpu as pltpu


_INV_SQRT2 = 1.0 / math.sqrt(2.0)


def _gelu_exact(x):
    # PyTorch nn.GELU() default: 0.5 * x * (1 + erf(x / sqrt(2)))
    return 0.5 * x * (1.0 + lax.erf(x * _INV_SQRT2))


# ----------------------------------------------------------------------------
# Kernels
# ----------------------------------------------------------------------------
def mlp_block_kernel_single(x_ref, w1_ref, w2_ref, o_ref):
    # Whole 4H dimension in one step: no accumulator needed.
    # x_ref: (tm, H), w1_ref: (H, 4H), w2_ref: (4H, H), o_ref: (tm, H)
    h = jnp.dot(x_ref[...], w1_ref[...], preferred_element_type=jnp.float32)
    g = _gelu_exact(h)
    o_ref[...] = jnp.dot(g.astype(w2_ref.dtype), w2_ref[...],
                         preferred_element_type=jnp.float32).astype(o_ref.dtype)


def mlp_block_kernel_multi(x_ref, w1_ref, w2_ref, o_ref, acc_ref):
    # x_ref  : (tm, H)   row tile of tokens (constant across k -> not re-DMA'd)
    # w1_ref : (H, tk)   k-slab of fc_1 weight (transposed)
    # w2_ref : (tk, H)   k-slab of fc_2 weight (transposed)
    # o_ref  : (tm, H)   output tile
    # acc_ref: (tm, H)   f32 accumulator, persistent across the k axis
    k = pl.program_id(1)

    @pl.when(k == 0)
    def _():
        acc_ref[...] = jnp.zeros_like(acc_ref)

    h = jnp.dot(x_ref[...], w1_ref[...], preferred_element_type=jnp.float32)
    g = _gelu_exact(h)
    acc_ref[...] += jnp.dot(g.astype(w2_ref.dtype), w2_ref[...],
                            preferred_element_type=jnp.float32)

    @pl.when(k == pl.num_programs(1) - 1)
    def _():
        o_ref[...] = acc_ref[...].astype(o_ref.dtype)


# ----------------------------------------------------------------------------
# Tile selection (VMEM-budget aware, exact divisors -> no tail masking)
# ----------------------------------------------------------------------------
def _divisor_tile(dim, preferred, align):
    """Largest tile <= preferred dividing dim exactly (aligned if possible)."""
    if dim <= preferred:
        return dim
    t = (preferred // align) * align
    while t >= align:
        if dim % t == 0:
            return t
        t -= align
    for t in range(min(preferred, dim), 0, -1):
        if dim % t == 0:
            return t
    return dim


def _vmem_bytes(tm, tk, H, itemsize):
    # Double-buffered in/out blocks + f32 accumulator + (tm, tk) f32
    # intermediates (h, gelu) that live in vregs / spill to internal scratch.
    blocks = 2 * itemsize * (tm * H + H * tk + tk * H + tm * H)
    acc = 4 * tm * H
    inter = 2 * 4 * tm * tk
    return blocks + acc + inter


def _choose_tiles(M, H, four_h, itemsize):
    budget = 40 * 1024 * 1024  # headroom under v7x's 64 MiB physical VMEM
    tk = _divisor_tile(four_h, 512, 128)
    for tm_pref in (1024, 512, 256, 128, 64, 32, 16, 8):
        tm = _divisor_tile(M, tm_pref, 8)
        if _vmem_bytes(tm, tk, H, itemsize) <= budget:
            return tm, tk
    return _divisor_tile(M, 8, 8), tk


# ----------------------------------------------------------------------------
# Wrapper
# ----------------------------------------------------------------------------
def mlp_block(x, w1_t, w2_t, *, tm=None, tk=None):
    """x: (B, S, H); w1_t: (H, 4H); w2_t: (4H, H). Returns (B, S, H)."""
    B, S, H = x.shape
    four_h = w1_t.shape[1]
    assert w1_t.shape == (H, four_h)
    assert w2_t.shape == (four_h, H)

    M = B * S
    x2d = x.reshape(M, H)
    itemsize = jnp.dtype(x.dtype).itemsize

    auto_tm, auto_tk = _choose_tiles(M, H, four_h, itemsize)
    if tm is None:
        tm = auto_tm
    if tk is None:
        tk = auto_tk
    assert M % tm == 0 and four_h % tk == 0

    cost = pl.CostEstimate(
        flops=4 * M * H * four_h,               # 2 matmuls * 2*M*H*4H each
        transcendentals=M * four_h,             # one erf per intermediate elem
        bytes_accessed=itemsize * (2 * M * H + 2 * H * four_h),
    )
    vmem_limit = int(min(max(2 * _vmem_bytes(tm, tk, H, itemsize),
                             32 * 1024 * 1024),
                         64 * 1024 * 1024))

    if tk == four_h:
        # Fast path: no reduction over the 4H axis -> no scratch accumulator.
        grid_spec = pltpu.PrefetchScalarGridSpec(
            num_scalar_prefetch=0,
            grid=(M // tm,),
            in_specs=[
                pl.BlockSpec((tm, H), lambda i: (i, 0)),         # x row tile
                pl.BlockSpec((H, four_h), lambda i: (0, 0)),     # fc_1^T (whole)
                pl.BlockSpec((four_h, H), lambda i: (0, 0)),     # fc_2^T (whole)
            ],
            out_specs=pl.BlockSpec((tm, H), lambda i: (i, 0)),
        )
        kernel = mlp_block_kernel_single
        dim_sem = ("parallel",)
    else:
        grid_spec = pltpu.PrefetchScalarGridSpec(
            num_scalar_prefetch=0,
            grid=(M // tm, four_h // tk),
            in_specs=[
                pl.BlockSpec((tm, H), lambda i, k: (i, 0)),      # x row tile
                pl.BlockSpec((H, tk), lambda i, k: (0, k)),      # fc_1^T slab
                pl.BlockSpec((tk, H), lambda i, k: (k, 0)),      # fc_2^T slab
            ],
            out_specs=pl.BlockSpec((tm, H), lambda i, k: (i, 0)),
            scratch_shapes=[pltpu.VMEM((tm, H), jnp.float32)],   # accumulator
        )
        kernel = mlp_block_kernel_multi
        dim_sem = ("parallel", "arbitrary")

    out2d = pl.pallas_call(
        kernel,
        out_shape=jax.ShapeDtypeStruct((M, H), x.dtype),
        grid_spec=grid_spec,
        compiler_params=pltpu.CompilerParams(
            dimension_semantics=dim_sem,
            vmem_limit_bytes=vmem_limit,
        ),
        cost_estimate=cost,
    )(x2d, w1_t, w2_t)
    return out2d.reshape(B, S, H)


# ----------------------------------------------------------------------------
# Reference + tests
# ----------------------------------------------------------------------------
def reference_mlp_block(x, w1_t, w2_t):
    h = jnp.einsum("bsh,hf->bsf", x, w1_t)
    g = _gelu_exact(h)
    return jnp.einsum("bsf,fh->bsh", g, w2_t)


def _make_weights(key, hidden, dtype=jnp.float32):
    k1, k2 = jax.random.split(key)
    # nn.Linear(H, 4H, bias=False).weight: (4H, H), init ~ U(-1/sqrt(H), 1/sqrt(H))
    b1 = 1.0 / math.sqrt(hidden)
    fc1_w = jax.random.uniform(k1, (4 * hidden, hidden),
                               minval=-b1, maxval=b1, dtype=dtype)
    b2 = 1.0 / math.sqrt(4 * hidden)
    fc2_w = jax.random.uniform(k2, (hidden, 4 * hidden),
                               minval=-b2, maxval=b2, dtype=dtype)
    return fc1_w.T, fc2_w.T   # (H, 4H), (4H, H)


if __name__ == "__main__":
    key = jax.random.PRNGKey(0)
    kx1, kw1, kx2, kw2 = jax.random.split(key, 4)

    # --- Test 1: module-spec small shape (batch=2, seq=8, hidden=32) ---
    # Hits the single-step (no-accumulator) fast path.
    batch, seq, hidden = 2, 8, 32
    x = jax.random.normal(kx1, (batch, seq, hidden), dtype=jnp.float32)
    w1_t, w2_t = _make_weights(kw1, hidden)

    out = mlp_block(x, w1_t, w2_t)
    out = jax.block_until_ready(out)
    ref = reference_mlp_block(x, w1_t, w2_t)
    assert out.shape == (batch, seq, hidden)
    assert jnp.allclose(out, ref, atol=1e-5, rtol=1e-5), "mismatch (small shape)"

    # --- Test 2: exercise the multi-step (m, k) grid + accumulator path ---
    batch2, seq2, hidden2 = 2, 128, 128
    x2 = jax.random.normal(kx2, (batch2, seq2, hidden2), dtype=jnp.float32)
    w1_t2, w2_t2 = _make_weights(kw2, hidden2)

    out2 = mlp_block(x2, w1_t2, w2_t2, tm=64, tk=128)   # grid = (4, 4)
    out2 = jax.block_until_ready(out2)
    ref2 = reference_mlp_block(x2, w1_t2, w2_t2)
    assert out2.shape == (batch2, seq2, hidden2)
    assert jnp.allclose(out2, ref2, atol=1e-4, rtol=1e-4), "mismatch (tiled grid)"

    # TODO(synk): dropout with p>0 (training mode) would need pltpu.prng_seed /
    # prng_random_bits inside the kernel; module default p=0.0 is the identity.
    print("KERNEL_OK")
</pallas_src>

<mosaic_0001>
module attributes {stable_mosaic.version = 11 : i64} {
  func.func @mlp_block_kernel_single(%arg0: i32, %arg1: memref<16x32xf32, #tpu.memory_space<vmem>>, %arg2: memref<32x128xf32, #tpu.memory_space<vmem>>, %arg3: memref<128x32xf32, #tpu.memory_space<vmem>>, %arg4: memref<16x32xf32, #tpu.memory_space<vmem>>) attributes {dimension_semantics = [#tpu.dimension_semantics<parallel>], iteration_bounds = array<i64: 1>, scalar_prefetch = 0 : i64, scratch_operands = 0 : i64, tpu.core_type = #tpu.core_type<tc>, window_params = [{transform_indices = @transform_0, window_bounds = array<i64: 16, 32>}, {pipeline_mode = #tpu.pipeline_mode<synchronous>, transform_indices = @transform_1, window_bounds = array<i64: 32, 128>}, {pipeline_mode = #tpu.pipeline_mode<synchronous>, transform_indices = @transform_2, window_bounds = array<i64: 128, 32>}, {transform_indices = @transform_3, window_bounds = array<i64: 16, 32>}]} {
    %c0 = arith.constant 0 : index
    %c0_0 = arith.constant 0 : index
    %0 = vector.load %arg1[%c0, %c0_0] : memref<16x32xf32, #tpu.memory_space<vmem>>, vector<16x32xf32>
    %c0_1 = arith.constant 0 : index
    %c0_2 = arith.constant 0 : index
    %1 = vector.load %arg2[%c0_1, %c0_2] : memref<32x128xf32, #tpu.memory_space<vmem>>, vector<32x128xf32>
    %cst = arith.constant dense<0.000000e+00> : vector<16x128xf32>
    %2 = tpu.matmul %0, %1, %cst {dimension_numbers = #tpu.dot_dimension_numbers<[1], [0], [0], [1], [0, 0, 1, 1], [], []>} : vector<16x32xf32>, vector<32x128xf32>, vector<16x128xf32> -> vector<16x128xf32>
    %cst_3 = arith.constant 5.000000e-01 : f32
    %3 = vector.broadcast %cst_3 : f32 to vector<16x128xf32>
    %4 = arith.mulf %3, %2 : vector<16x128xf32>
    %cst_4 = arith.constant 0.707106769 : f32
    %5 = vector.broadcast %cst_4 : f32 to vector<16x128xf32>
    %6 = arith.mulf %2, %5 : vector<16x128xf32>
    %7 = math.erf %6 : vector<16x128xf32>
    %cst_5 = arith.constant 1.000000e+00 : f32
    %8 = vector.broadcast %cst_5 : f32 to vector<16x128xf32>
    %9 = arith.addf %8, %7 : vector<16x128xf32>
    %10 = arith.mulf %4, %9 : vector<16x128xf32>
    %c0_6 = arith.constant 0 : index
    %c0_7 = arith.constant 0 : index
    %11 = vector.load %arg3[%c0_6, %c0_7] : memref<128x32xf32, #tpu.memory_space<vmem>>, vector<128x32xf32>
    %cst_8 = arith.constant dense<0.000000e+00> : vector<16x32xf32>
    %12 = tpu.matmul %10, %11, %cst_8 {dimension_numbers = #tpu.dot_dimension_numbers<[1], [0], [0], [1], [0, 0, 1, 1], [], []>} : vector<16x128xf32>, vector<128x32xf32>, vector<16x32xf32> -> vector<16x32xf32>
    %c0_9 = arith.constant 0 : index
    %c0_10 = arith.constant 0 : index
    %13 = vector.load %arg4[%c0_9, %c0_10] : memref<16x32xf32, #tpu.memory_space<vmem>>, vector<16x32xf32>
    tpu.vector_store %arg4[%c0_9, %c0_10], %12 {strides = array<i32>} : memref<16x32xf32, #tpu.memory_space<vmem>>, vector<16x32xf32>,
    return
  }
  func.func @transform_0(%arg0: i32) -> (i32, i32) {
    %c0_i32 = arith.constant 0 : i32
    %c0_i32_0 = arith.constant 0 : i32
    return %arg0, %c0_i32 : i32, i32
  }
  func.func @transform_1(%arg0: i32) -> (i32, i32) {
    %c0_i32 = arith.constant 0 : i32
    %c0_i32_0 = arith.constant 0 : i32
    %c0_i32_1 = arith.constant 0 : i32
    return %c0_i32, %c0_i32_0 : i32, i32
  }
  func.func @transform_2(%arg0: i32) -> (i32, i32) {
    %c0_i32 = arith.constant 0 : i32
    %c0_i32_0 = arith.constant 0 : i32
    %c0_i32_1 = arith.constant 0 : i32
    return %c0_i32, %c0_i32_0 : i32, i32
  }
  func.func @transform_3(%arg0: i32) -> (i32, i32) {
    %c0_i32 = arith.constant 0 : i32
    %c0_i32_0 = arith.constant 0 : i32
    return %arg0, %c0_i32 : i32, i32
  }
}

</mosaic_0001>

<bundles_post_ra>
// kernel: tpu_custom_call.1
= control target key start
LH: loop header
LB: loop body
LE: loop exit
PB: predicated region body
PF: predicated region fallthrough
CT: control target
= control target key end

     0   :  { %vm21_vm0 = vcmask 261120   ;;  %s470_s0 = inlined_call_operand.vmem [shape: f32[16,32], index: 0, kind: input, shape index: {}]   ;;  %s471_s1 = inlined_call_operand.vmem [shape: f32[32,128], index: 1, kind: input, shape index: {}]   ;;  %s472_s2 = inlined_call_operand.vmem [shape: f32[128,32], index: 2, kind: input, shape index: {}]   ;;  %s473_s3 = inlined_call_operand.hbm [shape: f32[16,32], index: 3, kind: output, shape index: {}]  }
   0x1   :  { %v17_v0 = vld [vmem:[%s471_s1] sm:$0xff]  ;;  %v18_v1 = vld [vmem:[%s471_s1 + $0x8] sm:$0xff]  ;;  %v19_v2 = vld [vmem:[%s471_s1 + $0x10] sm:$0xff] }
   0x2   :  { %v294_v3 = vpack.c.bf16 %v18_v1, %v17_v0  ;;  %v20_v4 = vld [vmem:[%s471_s1 + $0x18] sm:$0xff]  ;;  %v15_v5 = vld [vmem:[%s470_s0] sm:$0xff]  ;;  %v114_v8 = vld [vmem:[%s472_s2 + $0x8] sm:$0xff] }
   0x3   :  { %v298_v6 = vpack.c.bf16 %v20_v4, %v19_v2  ;;  %256 = vmatprep.mubr.msk.f32.mxu0 %vm21_vm0, %v15_v5  ;;  %v113_v7 = vld [vmem:[%s472_s2] sm:$0xff]  ;;  %v115_v9 = vld [vmem:[%s472_s2 + $0x10] sm:$0xff]  ;;  %v116_v11 = vld [vmem:[%s472_s2 + $0x18] sm:$0xff] }
   0x4   :  { %295 = vmatprep.subr.bf16.mxu0 %v294_v3  ;;  %v302_v10 = vpack.c.bf16 %v114_v8, %v113_v7  ;;  %v306_v12 = vpack.c.bf16 %v116_v11, %v115_v9  ;;  %v117_v13 = vld [vmem:[%s472_s2 + $0x20] sm:$0xff]  ;;  %v118_v14 = vld [vmem:[%s472_s2 + $0x28] sm:$0xff] }
   0x5   :  { %297 = vmatpush3.bf16.msra.mxu0 %v294_v3 }
   0x6   :  { %8 = vsyncpa [#allocation3], 0  ;;  %299 = vmatprep.subr.bf16.mxu0 %v298_v6  ;;  %303 = vmatprep.subr.bf16.mxu1 %v302_v10  ;;  %v310_v15 = vpack.c.bf16 %v118_v14, %v117_v13  ;;  %v16_v16 = vld [vmem:[%s470_s0 + $0x8] sm:$0xff]  ;;  %v119_v17 = vld [vmem:[%s472_s2 + $0x30] sm:$0xff] }
   0x7   :  { %305 = vmatpush3.bf16.msra.mxu1 %v302_v10  ;;  %v120_v18 = vld [vmem:[%s472_s2 + $0x38] sm:$0xff]  ;;  %v121_v20 = vld [vmem:[%s472_s2 + $0x40] sm:$0xff]  ;;  %v122_v21 = vld [vmem:[%s472_s2 + $0x48] sm:$0xff] }
   0x8   :  { %307 = vmatprep.subr.bf16.mxu1 %v306_v12  ;;  %v314_v19 = vpack.c.bf16 %v120_v18, %v119_v17  ;;  %v318_v22 = vpack.c.bf16 %v122_v21, %v121_v20  ;;  %v123_v23 = vld [vmem:[%s472_s2 + $0x50] sm:$0xff]  ;;  %v124_v24 = vld [vmem:[%s472_s2 + $0x58] sm:$0xff]  ;;  %v125_v26 = vld [vmem:[%s472_s2 + $0x60] sm:$0xff] }
   0x9   :  { %301 = vmatpush3.bf16.msra.mxu0 %v298_v6  ;;  %v322_v25 = vpack.c.bf16 %v124_v24, %v123_v23  ;;  %v126_v27 = vld [vmem:[%s472_s2 + $0x68] sm:$0xff]  ;;  %v127_v29 = vld [vmem:[%s472_s2 + $0x70] sm:$0xff]  ;;  %v128_v30 = vld [vmem:[%s472_s2 + $0x78] sm:$0xff]  ;;  %s365_s2 = smov [#allocation2]  }
   0xa   :  { %v326_v28 = vpack.c.bf16 %v126_v27, %v125_v26  ;;  %v330_v31 = vpack.c.bf16 %v128_v30, %v127_v29  ;;  %s211_s27 = sshll.u32 %s365_s2, 4  ;;  %s212_s27 = int_to_ptr.vmem [resolvable:$true] %s211_s27 }
   0xb   :  { %309 = vmatpush3.bf16.msra.mxu1 %v306_v12  ;;  %s341_s1 = scalar_lea.vmem %s212_s27, 256  ;;  %p346_p1 = scmp.lt.s32.totalorder %s212_s27, %s212_s27 }
   0xc   :  { %257 = vmatmul.mubr.msk.f32.vlgmr.msra.gmra.mrb[0].mxu0 %vm21_vm0, %v16_v16  ;;  %311 = vmatprep.subr.bf16.mxu1 %v310_v15  ;;  %p342_p0 = scmp.ne.s32.totalorder %s212_s27, %s341_s1  ;;  %p347_p2 = scmp.lt.s32.totalorder %s341_s1, %s341_s1 }
   0xe   :  { %p348_p3 = por %p347_p2, %p346_p1 }
   0xf   :  { %313 = vmatpush3.bf16.msra.mxu1 %v310_v15 }
  0x10   :  { %315 = vmatprep.subr.bf16.mxu1 %v314_v19  ;;  %p349_p4 = pnand %p348_p3, %p342_p0 }
  0x13   :  { %317 = vmatpush3.bf16.msra.mxu1 %v314_v19 }
  0x14   :  { %319 = vmatprep.subr.bf16.mxu1 %v318_v22 }
  0x17   :  { %321 = vmatpush3.bf16.msra.mxu1 %v318_v22 }
  0x18   :  { %323 = vmatprep.subr.bf16.mxu1 %v322_v25 }
  0x1b   :  { %325 = vmatpush3.bf16.msra.mxu1 %v322_v25 }
  0x1c   :  { %327 = vmatprep.subr.bf16.mxu1 %v326_v28 }
  0x1f   :  { %329 = vmatpush3.bf16.msra.mxu1 %v326_v28 }
  0x20   :  { %331 = vmatprep.subr.bf16.mxu1 %v330_v31 }
  0x23   :  { %333 = vmatpush3.bf16.msra.mxu1 %v330_v31 }
  0xdf   :  { %v258_v32 = vpop.f32.mrb[0].mxu0 }
  0xe0   :  { %v106_v33 = vmul.f32 0.70710677, %v258_v32  ;;  %v94_v34 = vpop.f32.mrb[1].mxu0  ;;  %v104_v41 = vmul.f32 0.5, %v258_v32 }
  0xe1   :  { %v105_v35 = vmul.f32 0.70710677, %v94_v34  ;;  %v103_v39 = vmul.f32 0.5, %v94_v34 }
  0xe2   :  { %337 = verf.f32 %v106_v33 }
  0xe3   :  { %339 = verf.f32 %v105_v35 }
  0xec   :  { %v338_v36 = vpop.eup %337 }
  0xed   :  { %v340_v37 = vpop.eup %339  ;;  %v110_v38 = vadd.f32 1.0, %v338_v36 }
  0xee   :  { %v109_v40 = vadd.f32 1.0, %v340_v37 }
  0xef   :  { %v112_v43 = vmul.f32 %v110_v38, %v104_v41 }
  0xf0   :  { %v111_v42 = vmul.f32 %v109_v40, %v103_v39 }
  0xf2   :  { %291 = vmatprep.mubr.f32.mxu1 %v111_v42 }
  0xf3   :  { %292 = vmatmul.mubr.f32.vlgmr.msra.gmra.mrb[0].mxu1 %v112_v43 }
 0x1c6   :  { %v293_v44 = vpop.f32.mrb[0].mxu1 }
 0x1c7   :  { %205 = vst.msk [vmem:[#allocation2 + $0x8] sm:$0xff] %vm21_vm0, %v293_v44  ;;  %v195_v45 = vpop.f32.mrb[1].mxu1 }
 0x1c8   :  { %204 = vst.msk [vmem:[#allocation2] sm:$0xff] %vm21_vm0, %v195_v45 }
 0x1c9   :  { %352 = shalt.err (!%p349_p4)
}
 0x1ca   :  { %s353_s30 = scalar_lea.hbm %s473_s3, 256 }
 0x1cb   :  { %p354_p5 = scmp.ne.s32.totalorder %s473_s3, %s353_s30  ;;  %p357_p6 = scmp.lt.u32.totalorder %s353_s30, %s473_s3 }
 0x1cd   :  { %p359_p7 = pnand %p357_p6, %p354_p5 }
 0x1cf   :  { %362 = shalt.err (!%p359_p7)
}
 0x1d0   :  { %s366_s8 = smov 128   ;;  %s367_s9 = smov 8  }
 0x1d1   :  { %217 = dma.vmem_to_hbm [thread:$0]  %s212_s27, 256, %s473_s3, [#allocation3], %s366_s8, %s366_s8, %s367_s9  }
 0x1d2   :  { %363 = dma.done.wait [#allocation3], 256  }
 0x1d3   :  { %364 = vsyncadd [#allocation3], 4294967040 }
 0x1d4   :  { %221 = vsyncpa [#allocation3], 1 }

</bundles_post_ra>
